<compile_context>
chip_gen: v7x
topology: tpu7x:2x2x1
jax: 0.10.0
libtpu: 0.0.40
codegen_flags: <defaults>
</compile_context>

<pallas_src>
import functools

import numpy as np
import jax
import jax.numpy as jnp
from jax import lax
from jax.experimental import pallas as pl
from jax.experimental.pallas import tpu as pltpu


_LANE = 128
# Budget for the double-buffered (n, tile_d) input tiles; together with the
# column-sum and Gram blocks this keeps total VMEM well under v5e's 16 MiB
# default scoped limit (v6e/v7x defaults are >= 32 MiB), so no vmem override.
_INPUT_VMEM_BUDGET_BYTES = 8 * 1024 * 1024


def _choose_tile_d(n, d):
    """Derive tile_d from n and the VMEM budget (multiple of 128 lanes)."""
    max_tile = (_INPUT_VMEM_BUDGET_BYTES // (2 * n * 4)) // _LANE * _LANE
    max_tile = max(max_tile, _LANE)
    return d if d <= max_tile else max_tile


# ---------------------------------------------------------------------------
# Fused Pallas kernel: one pass over the (n, d) slab producing
#   * per-core partial Gram matrices  (ncores, n, n)  [reduction over d tiles]
#   * unweighted per-column sums      (1, d)          [lane-dense, per tile]
# ---------------------------------------------------------------------------
def _make_gram_colsum_kernel(d, tile_d, half):
    ragged = (d % tile_d) != 0

    def kernel(x_ref, gram_ref, colsum_ref):
        k = pl.program_id(1)
        x = x_ref[...].astype(jnp.float32)                   # (n, tile_d)

        if ragged:
            # Mask lanes past the true d on the (possibly) ragged last tile.
            t = pl.program_id(0) * half + k                   # global tile idx
            lane = lax.broadcasted_iota(jnp.int32, x.shape, 1)
            x = jnp.where(t * tile_d + lane < d, x, 0.0)

        @pl.when(k == 0)
        def _init():
            gram_ref[...] = jnp.zeros_like(gram_ref)

        # Gram contribution on the MXU, contracting the lane (d) axis.
        gram_ref[...] += lax.dot_general(
            x, x, (((1,), (1,)), ((), ())),
            preferred_element_type=jnp.float32)

        # Fused unweighted column sum -> removes the 2nd full-slab HBM pass.
        colsum_ref[...] = jnp.sum(x, axis=0, keepdims=True)

    return kernel


@functools.partial(jax.jit, static_argnames=("tile_d",))
def _cost_and_colsum(xT, *, tile_d):
    """xT: (n, d). Returns (cosine cost (n, n) f32, column sums (1, d) f32)."""
    n, d = xT.shape
    num_k = pl.cdiv(d, tile_d)
    # v7x: split the d tiles across both TensorCores when they divide evenly.
    ncores = 2 if (num_k >= 2 and num_k % 2 == 0) else 1
    half = num_k // ncores

    kernel = _make_gram_colsum_kernel(d, tile_d, half)

    gram_parts, colsum = pl.pallas_call(
        kernel,
        out_shape=(jax.ShapeDtypeStruct((ncores, n, n), jnp.float32),
                   jax.ShapeDtypeStruct((1, d), jnp.float32)),
        grid_spec=pltpu.PrefetchScalarGridSpec(
            num_scalar_prefetch=0,
            grid=(ncores, half),
            in_specs=[pl.BlockSpec((n, tile_d),
                                   lambda c, k: (0, c * half + k))],
            out_specs=[pl.BlockSpec((None, n, n), lambda c, k: (c, 0, 0)),
                       pl.BlockSpec((1, tile_d),
                                    lambda c, k: (0, c * half + k))]),
        compiler_params=pltpu.CompilerParams(
            dimension_semantics=("parallel", "arbitrary")),
        cost_estimate=pl.CostEstimate(
            flops=2 * n * n * d, transcendentals=0,
            bytes_accessed=(n * d + ncores * n * n + d) * 4),
    )(xT)

    gram = jnp.sum(gram_parts, axis=0)                        # (n, n)
    norm2 = jnp.diagonal(gram)                                # ||x_i||^2
    inv = lax.rsqrt(jnp.maximum(norm2, 1e-12))                # zero-norm safe
    cost = gram * inv[:, None] * inv[None, :]
    return cost, colsum


# ---------------------------------------------------------------------------
# Host-side: maximum-spanning-forest (n-2 edges) + component-median selection.
# Vectorized greedy edge selection (masked argmax) + path-compressed find;
# same tie-breaking (first row-major maximum) and semantics as the reference.
# ---------------------------------------------------------------------------
def _find(i, parent):
    root = i
    while parent[root] != root:
        root = parent[root]
    while parent[i] != root:          # path compression
        parent[i], i = root, parent[i]
    return root


def mst_select_attackers(cost):
    cost = np.asarray(cost, dtype=np.float64)
    n = cost.shape[0]
    parent = list(range(n))
    edges = []
    for _ in range(max(n - 2, 0)):
        roots = np.fromiter((_find(i, parent) for i in range(n)),
                            dtype=np.int64, count=n)
        valid = roots[:, None] != roots[None, :]
        if not valid.any():
            break
        masked = np.where(valid, cost, -np.inf)
        a, b = np.unravel_index(int(np.argmax(masked)), (n, n))
        a, b = int(a), int(b)
        parent[_find(a, parent)] = _find(b, parent)
        edges.append((a, b))

    # connected components of the undirected edge forest (insertion order)
    adj = {i: set() for i in range(n)}
    for a, b in edges:
        adj[a].add(b)
        adj[b].add(a)
    seen = set()
    components = []
    for s in range(n):
        if s in seen:
            continue
        comp = []
        stack = [s]
        seen.add(s)
        while stack:
            u = stack.pop()
            comp.append(u)
            for v in sorted(adj[u]):
                if v not in seen:
                    seen.add(v)
                    stack.append(v)
        node_set = set(comp)
        comp_edges = [(a, b) for (a, b) in edges if a in node_set]
        components.append((comp, comp_edges))

    min_d = -1 * n
    p = []
    for comp, comp_edges in components:
        if len(comp) < 2:
            p = comp
            break
        if len(comp) > n - 2:
            p = [j for j in range(n) if j not in comp]
            break
        d = np.median([cost[a][b] for (a, b) in comp_edges])
        if d > min_d:
            min_d = d
            p = comp
    return p


# ---------------------------------------------------------------------------
# Net.forward equivalent
# ---------------------------------------------------------------------------
def net_forward(x):
    """x: (1, d, n) float32.  Returns (out (d, 1) float32, attackers list)."""
    x2d = x[0]                                   # squeeze(0) -> (d, n)
    d, n = x2d.shape
    # TODO(synk): if the producer can deliver the slab as (n, d) directly this
    # transpose (one extra HBM read+write) disappears entirely.
    xT = jnp.transpose(x2d)                      # (n, d): d on the 128-lane axis

    tile_d = _choose_tile_d(n, d)
    cost, colsum = _cost_and_colsum(xT, tile_d=tile_d)   # single fused Pallas pass
    cost_np = np.asarray(jax.device_get(cost))   # only host sync in the forward
    p = mst_select_attackers(cost_np)            # host graph algorithm

    keep_cnt = n - len(p)
    # TODO(synk): reference yields NaN if every column is an attacker; clamped here.
    denom = float(max(keep_cnt, 1))

    total = colsum[0]                            # (d,)
    if p:                                        # tiny |p|-row correction only
        atk = jnp.sum(xT[np.asarray(p, dtype=np.int32), :], axis=0)
    else:
        atk = jnp.zeros_like(total)
    out = ((total - atk) / denom)[:, None]       # (d, 1) == torch.mean(..., keepdim=True)
    return out, p


if __name__ == "__main__":
    key = jax.random.PRNGKey(0)
    B, D, N = 1, 32, 8
    x = jax.random.normal(key, (B, D, N), dtype=jnp.float32)

    out, attackers = net_forward(x)
    out = jax.block_until_ready(out)

    assert out.shape == (D, 1)
    assert out.dtype == jnp.float32

    # --- fused kernel vs numpy references (single-tile path) ---
    x_np = np.asarray(x[0]).astype(np.float64)                 # (D, N)
    xn = x_np / np.sqrt((x_np ** 2).sum(axis=0, keepdims=True))
    cos_ref = xn.T @ xn
    cost_dev, colsum_dev = _cost_and_colsum(jnp.transpose(x[0]),
                                            tile_d=_choose_tile_d(N, D))
    np.testing.assert_allclose(np.asarray(cost_dev), cos_ref, rtol=1e-5, atol=1e-5)
    np.testing.assert_allclose(np.asarray(colsum_dev)[0], x_np.sum(axis=1),
                               rtol=1e-5, atol=1e-5)

    # --- final output vs plain numpy kept-column mean ---
    keep = [j for j in range(N) if j not in attackers]
    ref = x_np[:, keep].mean(axis=1, keepdims=True)
    np.testing.assert_allclose(np.asarray(out), ref, rtol=1e-5, atol=1e-5)

    # --- exercise the multi-tile / ragged-mask / dual-core path ---
    D2, N2 = 1000, 8                     # cdiv(1000, 256) = 4 tiles -> 2 "cores"
    x2 = jax.random.normal(jax.random.PRNGKey(1), (1, D2, N2), dtype=jnp.float32)
    xT2 = jnp.transpose(x2[0])
    cost2, colsum2 = _cost_and_colsum(xT2, tile_d=256)
    x2_np = np.asarray(x2[0]).astype(np.float64)
    xn2 = x2_np / np.sqrt((x2_np ** 2).sum(axis=0, keepdims=True))
    np.testing.assert_allclose(np.asarray(cost2), xn2.T @ xn2,
                               rtol=1e-4, atol=1e-4)
    np.testing.assert_allclose(np.asarray(colsum2)[0], x2_np.sum(axis=1),
                               rtol=1e-4, atol=1e-4)

    print("KERNEL_OK")
</pallas_src>

<mosaic_0001>
module attributes {stable_mosaic.version = 11 : i64} {
  func.func @kernel(%arg0: i32, %arg1: i32, %arg2: memref<8x32xf32, #tpu.memory_space<vmem>>, %arg3: memref<1x8x8xf32, #tpu.memory_space<vmem>>, %arg4: memref<1x32xf32, #tpu.memory_space<vmem>>) attributes {dimension_semantics = [#tpu.dimension_semantics<parallel>, #tpu.dimension_semantics<arbitrary>], iteration_bounds = array<i64: 1, 1>, scalar_prefetch = 0 : i64, scratch_operands = 0 : i64, tpu.core_type = #tpu.core_type<tc>, window_params = [{transform_indices = @transform_0, window_bounds = array<i64: 8, 32>}, {transform_indices = @transform_1, window_bounds = array<i64: 1, 8, 8>}, {transform_indices = @transform_2, window_bounds = array<i64: 1, 32>}]} {
    %c0 = arith.constant 0 : index
    %c0_0 = arith.constant 0 : index
    %0 = vector.load %arg2[%c0, %c0_0] : memref<8x32xf32, #tpu.memory_space<vmem>>, vector<8x32xf32>
    %c0_i32 = arith.constant 0 : i32
    %1 = arith.cmpi eq, %arg1, %c0_i32 : i32
    %2 = arith.extui %1 : i1 to i32
    %c0_i32_1 = arith.constant 0 : i32
    %3 = arith.cmpi ne, %2, %c0_i32_1 : i32
    scf.if %3 {
      %cst_11 = arith.constant 0.000000e+00 : f32
      %14 = vector.broadcast %cst_11 : f32 to vector<8x8xf32>
      %c0_12 = arith.constant 0 : index
      %c0_13 = arith.constant 0 : index
      %c0_14 = arith.constant 0 : index
      %15 = vector.load %arg3[%c0_12, %c0_13, %c0_14] : memref<1x8x8xf32, #tpu.memory_space<vmem>>, vector<1x8x8xf32>
      %16 = vector.shape_cast %15 : vector<1x8x8xf32> to vector<8x8xf32>
      %17 = vector.shape_cast %14 : vector<8x8xf32> to vector<1x8x8xf32>
      tpu.vector_store %arg3[%c0_12, %c0_13, %c0_14], %17 {strides = array<i32>} : memref<1x8x8xf32, #tpu.memory_space<vmem>>, vector<1x8x8xf32>,
    } else {
    }
    %c0_2 = arith.constant 0 : index
    %c0_3 = arith.constant 0 : index
    %c0_4 = arith.constant 0 : index
    %4 = vector.load %arg3[%c0_2, %c0_3, %c0_4] : memref<1x8x8xf32, #tpu.memory_space<vmem>>, vector<1x8x8xf32>
    %5 = vector.shape_cast %4 : vector<1x8x8xf32> to vector<8x8xf32>
    %cst = arith.constant dense<0.000000e+00> : vector<8x8xf32>
    %6 = tpu.matmul %0, %0, %cst {dimension_numbers = #tpu.dot_dimension_numbers<[1], [1], [0], [0], [0, 0, 1, 0], [], []>} : vector<8x32xf32>, vector<8x32xf32>, vector<8x8xf32> -> vector<8x8xf32>
    %7 = arith.addf %5, %6 : vector<8x8xf32>
    %c0_5 = arith.constant 0 : index
    %c0_6 = arith.constant 0 : index
    %c0_7 = arith.constant 0 : index
    %8 = vector.load %arg3[%c0_5, %c0_6, %c0_7] : memref<1x8x8xf32, #tpu.memory_space<vmem>>, vector<1x8x8xf32>
    %9 = vector.shape_cast %8 : vector<1x8x8xf32> to vector<8x8xf32>
    %10 = vector.shape_cast %7 : vector<8x8xf32> to vector<1x8x8xf32>
    tpu.vector_store %arg3[%c0_5, %c0_6, %c0_7], %10 {strides = array<i32>} : memref<1x8x8xf32, #tpu.memory_space<vmem>>, vector<1x8x8xf32>,
    %cst_8 = arith.constant dense<0.000000e+00> : vector<32xf32>
    %11 = vector.multi_reduction <add>, %0, %cst_8 [0] : vector<8x32xf32> to vector<32xf32>
    %12 = vector.shape_cast %11 : vector<32xf32> to vector<1x32xf32>
    %c0_9 = arith.constant 0 : index
    %c0_10 = arith.constant 0 : index
    %13 = vector.load %arg4[%c0_9, %c0_10] : memref<1x32xf32, #tpu.memory_space<vmem>>, vector<1x32xf32>
    tpu.vector_store %arg4[%c0_9, %c0_10], %12 {strides = array<i32>} : memref<1x32xf32, #tpu.memory_space<vmem>>, vector<1x32xf32>,
    return
  }
  func.func @transform_0(%arg0: i32, %arg1: i32) -> (i32, i32) {
    %c1_i32 = arith.constant 1 : i32
    %0 = arith.muli %arg0, %c1_i32 : i32
    %1 = arith.addi %0, %arg1 : i32
    %c0_i32 = arith.constant 0 : i32
    %c0_i32_0 = arith.constant 0 : i32
    return %c0_i32, %1 : i32, i32
  }
  func.func @transform_1(%arg0: i32, %arg1: i32) -> (i32, i32, i32) {
    %c0_i32 = arith.constant 0 : i32
    %c0_i32_0 = arith.constant 0 : i32
    %c0_i32_1 = arith.constant 0 : i32
    return %arg0, %c0_i32, %c0_i32_0 : i32, i32, i32
  }
  func.func @transform_2(%arg0: i32, %arg1: i32) -> (i32, i32) {
    %c1_i32 = arith.constant 1 : i32
    %0 = arith.muli %arg0, %c1_i32 : i32
    %1 = arith.addi %0, %arg1 : i32
    %c0_i32 = arith.constant 0 : i32
    %c0_i32_0 = arith.constant 0 : i32
    return %c0_i32, %1 : i32, i32
  }
}

</mosaic_0001>

<bundles_post_ra>
// kernel: _cost_and_colsum.1
= control target key start
LH: loop header
LB: loop body
LE: loop exit
PB: predicated region body
PF: predicated region fallthrough
CT: control target
= control target key end

     0   :  { %8 = vsyncpa [#allocation3], 0  ;;  %s259_s0 = inlined_call_operand.hbm [shape: f32[8,32], index: 0, kind: input, shape index: {}]   ;;  %s260_s1 = inlined_call_operand.vmem [shape: f32[1,8,8], index: 1, kind: output, shape index: {0}]   ;;  %s261_s2 = inlined_call_operand.hbm [shape: f32[1,32], index: 2, kind: output, shape index: {1}]  }
   0x1   :  { %9 = vsyncpa [#allocation4], 0  ;;  %s205_s9 = smov [#allocation2]   ;;  %s157_s13 = scalar_lea.hbm %s259_s0, 128 }
   0x2   :  { %s19_s10 = sshll.u32 %s205_s9, 4  ;;  %p158_p0 = scmp.ne.s32.totalorder %s259_s0, %s157_s13  ;;  %s20_s10 = int_to_ptr.vmem [resolvable:$true] %s19_s10 }
   0x3   :  { %p161_p1 = scmp.lt.u32.totalorder %s157_s13, %s259_s0 }
   0x5   :  { %p163_p2 = pnand %p161_p1, %p158_p0 }
   0x7   :  { %166 = shalt.err (!%p163_p2)
}
   0x8   :  { %s167_s18 = scalar_lea.vmem %s20_s10, 128  ;;  %p172_p4 = scmp.lt.s32.totalorder %s20_s10, %s20_s10 }
   0x9   :  { %p168_p3 = scmp.ne.s32.totalorder %s20_s10, %s167_s18  ;;  %p173_p5 = scmp.lt.s32.totalorder %s167_s18, %s167_s18 }
   0xb   :  { %p174_p6 = por %p173_p5, %p172_p4 }
   0xd   :  { %p175_p7 = pnand %p174_p6, %p168_p3 }
   0xf   :  { %178 = shalt.err (!%p175_p7)
}
  0x10   :  { %22 = dma.hbm_to_vmem [thread:$0]  %s259_s0, 128, %s20_s10, [#allocation3]  }
  0x11   :  { %201 = dma.done.wait [#allocation3], 128  }
  0x12   :  { %202 = vsyncadd [#allocation3], 4294967168  ;;  %vm33_vm0 = vcmask 64512   ;;  %v206_v0 = vmov 0.0   ;;  %vm207_vm1 = vmmov 0   ;;  %vm36_vm2 = vcmask 261120  }
  0x13   :  { %34 = vst.msk [vmem:[%s260_s1] sm:$0xff] %vm33_vm0, %v206_v0  ;;  %148 = vmatprep.subr.mxu0 %v206_v0  ;;  %150 = vmatprep.mubr.msk.f32.mxu0 %vm207_vm1, %v206_v0  ;;  %v28_v1 = vld [vmem:[#allocation2] sm:$0xff]  ;;  %vm120_vm3 = vcmask 253952   ;;  %s208_s0 = smov [#allocation5]  }
  0x14   :  { %149 = vmatpush3.xpose.msk.msra.mxu0 %vm36_vm2, %v28_v1  ;;  %v113_v2 = vsel %vm36_vm2, %v28_v1, 0.0  ;;  %s133_s23 = sshll.u32 %s208_s0, 4  ;;  %s134_s23 = int_to_ptr.vmem [resolvable:$true] %s133_s23 }
  0x15   :  { %v114_v3 = vrot.slane %v113_v2, 4  ;;  %s179_s24 = scalar_lea.vmem %s134_s23, 16  ;;  %s183_s25 = scalar_lea.vmem %s134_s23, 32 }
  0x16   :  { %p180_p8 = scmp.ne.s32.totalorder %s134_s23, %s179_s24  ;;  %p184_p9 = scmp.lt.s32.totalorder %s134_s23, %s134_s23 }
  0x17   :  { %151 = vmatmul.mubr.msk.f32.vlgmr.msra.gmra.mrb[0].mxu0 %vm36_vm2, %v28_v1  ;;  %v115_v4 = vadd.f32 %v114_v3, %v113_v2  ;;  %p185_p10 = scmp.lt.s32.totalorder %s183_s25, %s179_s24 }
  0x19   :  { %v116_v5 = vrot.slane %v115_v4, 2  ;;  %p186_p11 = por %p185_p10, %p184_p9 }
  0x1b   :  { %v117_v6 = vadd.f32 %v116_v5, %v115_v4  ;;  %p187_p12 = pnand %p186_p11, %p180_p8 }
  0x1d   :  { %v118_v7 = vrot.slane %v117_v6, 1 }
  0x1f   :  { %v119_v8 = vadd.f32 %v118_v7, %v117_v6 }
  0x21   :  { %121 = vst.msk [vmem:[#allocation5] sm:$0x1] %vm120_vm3, %v119_v8 }
  0x22   :  { %190 = shalt.err (!%p187_p12)
}
  0x23   :  { %s191_s28 = scalar_lea.hbm %s261_s2, 16 }
  0x24   :  { %p192_p13 = scmp.ne.s32.totalorder %s261_s2, %s191_s28  ;;  %p195_p0 = scmp.lt.u32.totalorder %s191_s28, %s261_s2 }
  0x26   :  { %p197_p1 = pnand %p195_p0, %p192_p13 }
  0x28   :  { %200 = shalt.err (!%p197_p1)
}
  0x29   :  { %136 = dma.vmem_to_hbm [thread:$0]  %s134_s23, 16, %s261_s2, [#allocation4]   ;;  %v35_v9 = vld [vmem:[%s260_s1] sm:$0xff] }
  0xea   :  { %v106_v10 = vpop.f32.mrb[0].mxu0 }
  0xeb   :  { %v110_v11 = vadd.f32 %v106_v10, %v35_v9  ;;  %v152_v12 = vpop.f32.mrb[1].mxu0 }
  0xed   :  { %112 = vst.msk [vmem:[%s260_s1] sm:$0xff] %vm33_vm0, %v110_v11 }
  0xee   :  { %203 = dma.done.wait [#allocation4], 16  }
  0xef   :  { %204 = vsyncadd [#allocation4], 4294967280 }
  0xf0   :  { %142 = vsyncpa [#allocation3], 1 }
  0xf1   :  { %143 = vsyncpa [#allocation4], 1 }

</bundles_post_ra>
